<compile_context>
chip_gen: v7x
topology: tpu7x:2x2x1
jax: 0.10.0
libtpu: 0.0.40
codegen_flags: <defaults>
</compile_context>

<pallas_src>
import functools

import jax
import jax.numpy as jnp
from jax import lax
from jax.experimental import pallas as pl
from jax.experimental.pallas import tpu as pltpu

LANE = 128
SUBLANE = 8


def _sublane_multiple(dtype):
    # f32 -> 8, bf16/f16 -> 16, int8/bool -> 32 (packed-dtype sublane tiling).
    return max(SUBLANE, 32 // max(1, jnp.dtype(dtype).itemsize))


def _round_up(x, m):
    return ((x + m - 1) // m) * m


def _tpu_defaults():
    """Generation-aware (num_cores, block_rows) defaults."""
    try:
        kind = jax.devices()[0].device_kind.lower()
    except Exception:
        kind = ""
    if "v7" in kind or "7x" in kind:
        # 2 TensorCores/chip; ~2x per-TC HBM BW -> bigger tiles amortize the
        # ~0.35 us per-grid-step overhead best here.
        return 2, 8192          # 4 MiB / input tile
    # v5e / v6e: single TensorCore -> no 2-way split, no clamped index_map.
    return 1, 4096              # 2 MiB / input tile


def _stable_sigmoid_and_bce(x, t):
    """sigmoid(x) and PyTorch-parity BCE (log terms clamped at -100).

    2 transcendentals per element (exp, log1p) + one exact divide.
    """
    e = jnp.exp(-jnp.abs(x))                        # EUP
    l1pe = jnp.log1p(e)                             # EUP
    # sigmoid without a second exp:  x>=0 -> 1/(1+e),  x<0 -> e/(1+e).
    p = jnp.where(x >= 0.0, 1.0, e) / (1.0 + e)
    log_p = jnp.minimum(x, 0.0) - l1pe              # log(sigmoid(x))
    log_1mp = -jnp.maximum(x, 0.0) - l1pe           # log(1 - sigmoid(x))
    bce = -(t * jnp.maximum(log_p, -100.0)
            + (1.0 - t) * jnp.maximum(log_1mp, -100.0))
    return p, bce


def _dice_bce_partial_kernel(x_ref, t_ref, out_ref, *,
                             blocks_per_core, total_blocks, block_rows,
                             rows_valid, rows_ragged, fully_regular):
    c = pl.program_id(0)   # "parallel" axis: TensorCore shard
    i = pl.program_id(1)   # "arbitrary" axis: sequential reduction

    # The out block (1, 3, 8, 128) keeps the same index across `i`, so it stays
    # resident in VMEM and acts as the accumulator.  Init on first visit.
    @pl.when(i == 0)
    def _():
        out_ref[...] = jnp.zeros(out_ref.shape, out_ref.dtype)

    x = x_ref[...].astype(jnp.float32)
    t = t_ref[...].astype(jnp.float32)
    p, bce = _stable_sigmoid_and_bce(x, t)
    pt = p * t
    ps = p + t

    def _reduce8(v):  # (block_rows, 128) -> (8, 128); pure VPU adds.
        return jnp.sum(v.reshape(block_rows // SUBLANE, SUBLANE, LANE), axis=0)

    def _accum(mask):
        if mask is None:
            pt_v, ps_v, b_v = pt, ps, bce
        else:
            zeros = jnp.zeros_like(pt)
            pt_v = jnp.where(mask, pt, zeros)
            ps_v = jnp.where(mask, ps, zeros)
            b_v = jnp.where(mask, bce, zeros)
        out_ref[0, 0, :, :] += _reduce8(pt_v)
        out_ref[0, 1, :, :] += _reduce8(ps_v)
        out_ref[0, 2, :, :] += _reduce8(b_v)

    g = c * blocks_per_core + i          # global block id
    last = total_blocks - 1

    if fully_regular:
        # Every block is full and every (c, i) maps to a distinct real block:
        # no masks, no branches in the steady state.
        _accum(None)
    else:
        @pl.when(g < last)
        def _():
            _accum(None)

        @pl.when(g == last)
        def _():
            if rows_ragged:
                # Only the last block can contain rows past the array end
                # (Pallas edge block); mask them by global row index.
                row = lax.broadcasted_iota(jnp.int32, (block_rows, LANE), 0)
                _accum(g * block_rows + row < rows_valid)
            else:
                _accum(None)
        # g > last (duplicate clamped block on an over-provisioned core): skipped.


def _tail_partial_sums(x_tail, t_tail):
    """Pure-JAX partial sums for the <128-element lane tail."""
    x = x_tail.astype(jnp.float32)
    t = t_tail.astype(jnp.float32)
    p, bce = _stable_sigmoid_and_bce(x, t)
    return jnp.stack([jnp.sum(p * t), jnp.sum(p + t), jnp.sum(bce)])


def dice_bce_loss(logits, targets, smooth=1.0, *, block_rows=None, num_cores=None):
    assert logits.shape == targets.shape
    n = int(logits.size)

    d_cores, d_rows = _tpu_defaults()
    num_cores = d_cores if num_cores is None else int(num_cores)
    block_rows = d_rows if block_rows is None else int(block_rows)

    x = logits.reshape(-1)
    t = targets.reshape(-1)

    rows_main = n // LANE            # lane-aligned prefix handled by the kernel
    n_main = rows_main * LANE
    n_tail = n - n_main              # <128 leftover elements -> JAX epilogue

    sums = jnp.zeros((3,), jnp.float32)   # [sum(p*t), sum(p)+sum(t), sum(bce)]

    if rows_main > 0:
        if n_tail:
            # Contiguous prefix slice (no full-array jnp.pad copy).
            x2 = x[:n_main].reshape(rows_main, LANE)
            t2 = t[:n_main].reshape(rows_main, LANE)
        else:
            x2 = x.reshape(rows_main, LANE)   # free reshape, zero copies
            t2 = t.reshape(rows_main, LANE)

        # Sublane multiple accommodates narrow native dtypes (bf16/int8 masks).
        mult = max(_sublane_multiple(x2.dtype), _sublane_multiple(t2.dtype))
        br = min(block_rows, _round_up(rows_main, mult))
        br = max(mult, (br // mult) * mult)

        total_blocks = pl.cdiv(rows_main, br)
        blocks_per_core = pl.cdiv(total_blocks, num_cores)
        needs_clamp = num_cores * blocks_per_core > total_blocks
        rows_ragged = (rows_main % br) != 0
        fully_regular = (not needs_clamp) and (not rows_ragged)

        if needs_clamp:
            # A core whose range runs past the end re-reads a valid block; its
            # contribution is skipped inside the kernel.
            def in_map(c, i):
                return (jnp.minimum(c * blocks_per_core + i, total_blocks - 1), 0)
        else:
            def in_map(c, i):
                return (c * blocks_per_core + i, 0)

        def mk_in_spec():
            if blocks_per_core >= 3:
                # 3-deep input buffering keeps the DMA engine busy across
                # grid-step boundaries (compute/tile << DMA/tile here).
                return pl.BlockSpec((br, LANE), in_map, pipeline_mode=pl.Buffered(3))
            return pl.BlockSpec((br, LANE), in_map)

        kernel = functools.partial(
            _dice_bce_partial_kernel,
            blocks_per_core=blocks_per_core,
            total_blocks=total_blocks,
            block_rows=br,
            rows_valid=rows_main,
            rows_ragged=rows_ragged,
            fully_regular=fully_regular,
        )

        out_bytes = num_cores * 3 * SUBLANE * LANE * 4
        cost = pl.CostEstimate(
            flops=24 * n_main,
            transcendentals=2 * n_main,
            bytes_accessed=(x2.size * x2.dtype.itemsize
                            + t2.size * t2.dtype.itemsize + out_bytes),
        )

        partials = pl.pallas_call(
            kernel,
            out_shape=jax.ShapeDtypeStruct((num_cores, 3, SUBLANE, LANE), jnp.float32),
            grid_spec=pltpu.PrefetchScalarGridSpec(
                num_scalar_prefetch=0,
                grid=(num_cores, blocks_per_core),
                in_specs=[mk_in_spec(), mk_in_spec()],
                out_specs=pl.BlockSpec((1, 3, SUBLANE, LANE),
                                       lambda c, i: (c, 0, 0, 0)),
            ),
            compiler_params=pltpu.CompilerParams(
                dimension_semantics=("parallel", "arbitrary"),
                vmem_limit_bytes=32 * 1024 * 1024),
            cost_estimate=cost,
        )(x2, t2)

        sums = sums + jnp.sum(partials, axis=(0, 2, 3))

    if n_tail:
        sums = sums + _tail_partial_sums(x[n_main:], t[n_main:])

    # Tiny scalar epilogue: combine partial sums into the loss.
    intersection, ps_sum, bce_sum = sums[0], sums[1], sums[2]
    smooth = jnp.float32(smooth)
    dice_loss = 1.0 - (2.0 * intersection + smooth) / (ps_sum + smooth)
    bce_mean = bce_sum / jnp.float32(n)
    return bce_mean + dice_loss


def dice_bce_loss_ref(logits, targets, smooth=1.0):
    # Mirrors PyTorch: sigmoid -> binary_cross_entropy (log clamp at -100) + dice.
    p = jax.nn.sigmoid(logits.reshape(-1).astype(jnp.float32))
    t = targets.reshape(-1).astype(jnp.float32)
    intersection = jnp.sum(p * t)
    dice = 1.0 - (2.0 * intersection + smooth) / (jnp.sum(p) + jnp.sum(t) + smooth)
    bce = jnp.mean(-(t * jnp.maximum(jnp.log(p), -100.0)
                     + (1.0 - t) * jnp.maximum(jnp.log1p(-p), -100.0)))
    return bce + dice


if __name__ == "__main__":
    key = jax.random.PRNGKey(0)
    keys = jax.random.split(key, 6)

    def check(logits, targets, **kw):
        out = jax.block_until_ready(dice_bce_loss(logits, targets, smooth=1.0, **kw))
        ref = jax.block_until_ready(dice_bce_loss_ref(logits, targets, smooth=1.0))
        assert jnp.allclose(out, ref, rtol=1e-5, atol=1e-5), (out, ref, kw)

    # NCHW segmentation logits / binary masks: batch=2, channels=4, 16x16 spatial.
    logits = jax.random.normal(keys[0], (2, 4, 16, 16), dtype=jnp.float32)
    targets = jax.random.bernoulli(keys[1], p=0.3, shape=(2, 4, 16, 16)).astype(jnp.float32)
    check(logits, targets)

    # Narrow target dtype stays narrow in HBM; the kernel upcasts in VMEM.
    check(logits, targets.astype(jnp.bfloat16))

    # Ragged element count (not a multiple of 128): lane-aligned prefix in the
    # kernel, <128-element tail via the pure-JAX epilogue (no jnp.pad copy).
    logits2 = jax.random.normal(keys[2], (2, 3, 7, 9), dtype=jnp.float32)
    targets2 = jax.random.bernoulli(keys[3], p=0.5, shape=(2, 3, 7, 9)).astype(jnp.float32)
    check(logits2, targets2)

    # Multi-block reduction + Buffered(3) path (blocks_per_core == 3).
    logits3 = jax.random.normal(keys[4], (2, 4, 96, 128), dtype=jnp.float32)
    targets3 = jax.random.bernoulli(keys[5], p=0.4, shape=(2, 4, 96, 128)).astype(jnp.float32)
    check(logits3, targets3, block_rows=128, num_cores=2)

    # Odd block count with a 2-way core split (clamped index_map, duplicate-block skip).
    check(logits3, targets3, block_rows=256, num_cores=2)

    print("KERNEL_OK")
</pallas_src>

<mosaic_0001>
module attributes {stable_mosaic.version = 11 : i64} {
  func.func @_dice_bce_partial_kernel(%arg0: i32, %arg1: i32, %arg2: memref<16x128xf32, #tpu.memory_space<vmem>>, %arg3: memref<16x128xf32, #tpu.memory_space<vmem>>, %arg4: memref<1x3x8x128xf32, #tpu.memory_space<vmem>>) attributes {dimension_semantics = [#tpu.dimension_semantics<parallel>, #tpu.dimension_semantics<arbitrary>], iteration_bounds = array<i64: 1, 1>, scalar_prefetch = 0 : i64, scratch_operands = 0 : i64, tpu.core_type = #tpu.core_type<tc>, window_params = [{transform_indices = @transform_0, window_bounds = array<i64: 16, 128>}, {transform_indices = @transform_1, window_bounds = array<i64: 16, 128>}, {transform_indices = @transform_2, window_bounds = array<i64: 1, 3, 8, 128>}]} {
    %c0_i32 = arith.constant 0 : i32
    %0 = arith.cmpi eq, %arg1, %c0_i32 : i32
    %1 = arith.extui %0 : i1 to i32
    %c0_i32_0 = arith.constant 0 : i32
    %2 = arith.cmpi ne, %1, %c0_i32_0 : i32
    scf.if %2 {
      %cst_39 = arith.constant 0.000000e+00 : f32
      %62 = vector.broadcast %cst_39 : f32 to vector<1x3x8x128xf32>
      %c0_40 = arith.constant 0 : index
      %c0_41 = arith.constant 0 : index
      %c0_42 = arith.constant 0 : index
      %c0_43 = arith.constant 0 : index
      %63 = vector.load %arg4[%c0_40, %c0_41, %c0_42, %c0_43] : memref<1x3x8x128xf32, #tpu.memory_space<vmem>>, vector<1x3x8x128xf32>
      tpu.vector_store %arg4[%c0_40, %c0_41, %c0_42, %c0_43], %62 {strides = array<i32>} : memref<1x3x8x128xf32, #tpu.memory_space<vmem>>, vector<1x3x8x128xf32>,
    } else {
    }
    %c0 = arith.constant 0 : index
    %c0_1 = arith.constant 0 : index
    %3 = vector.load %arg2[%c0, %c0_1] : memref<16x128xf32, #tpu.memory_space<vmem>>, vector<16x128xf32>
    %c0_2 = arith.constant 0 : index
    %c0_3 = arith.constant 0 : index
    %4 = vector.load %arg3[%c0_2, %c0_3] : memref<16x128xf32, #tpu.memory_space<vmem>>, vector<16x128xf32>
    %5 = math.absf %3 : vector<16x128xf32>
    %cst = arith.constant 0.000000e+00 : f32
    %6 = vector.broadcast %cst : f32 to vector<16x128xf32>
    %7 = arith.subf %6, %5 : vector<16x128xf32>
    %8 = math.exp %7 : vector<16x128xf32>
    %9 = math.log1p %8 : vector<16x128xf32>
    %cst_4 = arith.constant 0.000000e+00 : f32
    %10 = vector.broadcast %cst_4 : f32 to vector<16x128xf32>
    %11 = arith.cmpf oge, %3, %10 : vector<16x128xf32>
    %cst_5 = arith.constant 1.000000e+00 : f32
    %12 = vector.broadcast %cst_5 : f32 to vector<16x128xf32>
    %13 = arith.select %11, %12, %8 : vector<16x128xi1>, vector<16x128xf32>
    %cst_6 = arith.constant 1.000000e+00 : f32
    %14 = vector.broadcast %cst_6 : f32 to vector<16x128xf32>
    %15 = arith.addf %14, %8 : vector<16x128xf32>
    %16 = arith.divf %13, %15 : vector<16x128xf32>
    %cst_7 = arith.constant 0.000000e+00 : f32
    %17 = vector.broadcast %cst_7 : f32 to vector<16x128xf32>
    %18 = arith.minimumf %3, %17 : vector<16x128xf32>
    %19 = arith.subf %18, %9 : vector<16x128xf32>
    %cst_8 = arith.constant 0.000000e+00 : f32
    %20 = vector.broadcast %cst_8 : f32 to vector<16x128xf32>
    %21 = arith.maximumf %3, %20 : vector<16x128xf32>
    %cst_9 = arith.constant 0.000000e+00 : f32
    %22 = vector.broadcast %cst_9 : f32 to vector<16x128xf32>
    %23 = arith.subf %22, %21 : vector<16x128xf32>
    %24 = arith.subf %23, %9 : vector<16x128xf32>
    %cst_10 = arith.constant -1.000000e+02 : f32
    %25 = vector.broadcast %cst_10 : f32 to vector<16x128xf32>
    %26 = arith.maximumf %19, %25 : vector<16x128xf32>
    %27 = arith.mulf %4, %26 : vector<16x128xf32>
    %cst_11 = arith.constant 1.000000e+00 : f32
    %28 = vector.broadcast %cst_11 : f32 to vector<16x128xf32>
    %29 = arith.subf %28, %4 : vector<16x128xf32>
    %cst_12 = arith.constant -1.000000e+02 : f32
    %30 = vector.broadcast %cst_12 : f32 to vector<16x128xf32>
    %31 = arith.maximumf %24, %30 : vector<16x128xf32>
    %32 = arith.mulf %29, %31 : vector<16x128xf32>
    %33 = arith.addf %27, %32 : vector<16x128xf32>
    %cst_13 = arith.constant 0.000000e+00 : f32
    %34 = vector.broadcast %cst_13 : f32 to vector<16x128xf32>
    %35 = arith.subf %34, %33 : vector<16x128xf32>
    %36 = arith.mulf %16, %4 : vector<16x128xf32>
    %37 = arith.addf %16, %4 : vector<16x128xf32>
    %c0_14 = arith.constant 0 : index
    %c0_15 = arith.constant 0 : index
    %c0_16 = arith.constant 0 : index
    %c0_17 = arith.constant 0 : index
    %38 = vector.load %arg4[%c0_14, %c0_15, %c0_16, %c0_17] : memref<1x3x8x128xf32, #tpu.memory_space<vmem>>, vector<1x1x8x128xf32>
    %39 = vector.shape_cast %38 : vector<1x1x8x128xf32> to vector<8x128xf32>
    %40 = vector.shape_cast %36 : vector<16x128xf32> to vector<2x8x128xf32>
    %cst_18 = arith.constant dense<0.000000e+00> : vector<8x128xf32>
    %41 = vector.multi_reduction <add>, %40, %cst_18 [0] : vector<2x8x128xf32> to vector<8x128xf32>
    %42 = arith.addf %39, %41 : vector<8x128xf32>
    %c0_19 = arith.constant 0 : index
    %c0_20 = arith.constant 0 : index
    %c0_21 = arith.constant 0 : index
    %c0_22 = arith.constant 0 : index
    %43 = vector.load %arg4[%c0_19, %c0_20, %c0_21, %c0_22] : memref<1x3x8x128xf32, #tpu.memory_space<vmem>>, vector<1x1x8x128xf32>
    %44 = vector.shape_cast %43 : vector<1x1x8x128xf32> to vector<8x128xf32>
    %45 = vector.shape_cast %42 : vector<8x128xf32> to vector<1x1x8x128xf32>
    tpu.vector_store %arg4[%c0_19, %c0_20, %c0_21, %c0_22], %45 {strides = array<i32>} : memref<1x3x8x128xf32, #tpu.memory_space<vmem>>, vector<1x1x8x128xf32>,
    %c0_23 = arith.constant 0 : index
    %c1 = arith.constant 1 : index
    %c0_24 = arith.constant 0 : index
    %c0_25 = arith.constant 0 : index
    %46 = vector.load %arg4[%c0_23, %c1, %c0_24, %c0_25] : memref<1x3x8x128xf32, #tpu.memory_space<vmem>>, vector<1x1x8x128xf32>
    %47 = vector.shape_cast %46 : vector<1x1x8x128xf32> to vector<8x128xf32>
    %48 = vector.shape_cast %37 : vector<16x128xf32> to vector<2x8x128xf32>
    %cst_26 = arith.constant dense<0.000000e+00> : vector<8x128xf32>
    %49 = vector.multi_reduction <add>, %48, %cst_26 [0] : vector<2x8x128xf32> to vector<8x128xf32>
    %50 = arith.addf %47, %49 : vector<8x128xf32>
    %c0_27 = arith.constant 0 : index
    %c1_28 = arith.constant 1 : index
    %c0_29 = arith.constant 0 : index
    %c0_30 = arith.constant 0 : index
    %51 = vector.load %arg4[%c0_27, %c1_28, %c0_29, %c0_30] : memref<1x3x8x128xf32, #tpu.memory_space<vmem>>, vector<1x1x8x128xf32>
    %52 = vector.shape_cast %51 : vector<1x1x8x128xf32> to vector<8x128xf32>
    %53 = vector.shape_cast %50 : vector<8x128xf32> to vector<1x1x8x128xf32>
    tpu.vector_store %arg4[%c0_27, %c1_28, %c0_29, %c0_30], %53 {strides = array<i32>} : memref<1x3x8x128xf32, #tpu.memory_space<vmem>>, vector<1x1x8x128xf32>,
    %c0_31 = arith.constant 0 : index
    %c2 = arith.constant 2 : index
    %c0_32 = arith.constant 0 : index
    %c0_33 = arith.constant 0 : index
    %54 = vector.load %arg4[%c0_31, %c2, %c0_32, %c0_33] : memref<1x3x8x128xf32, #tpu.memory_space<vmem>>, vector<1x1x8x128xf32>
    %55 = vector.shape_cast %54 : vector<1x1x8x128xf32> to vector<8x128xf32>
    %56 = vector.shape_cast %35 : vector<16x128xf32> to vector<2x8x128xf32>
    %cst_34 = arith.constant dense<0.000000e+00> : vector<8x128xf32>
    %57 = vector.multi_reduction <add>, %56, %cst_34 [0] : vector<2x8x128xf32> to vector<8x128xf32>
    %58 = arith.addf %55, %57 : vector<8x128xf32>
    %c0_35 = arith.constant 0 : index
    %c2_36 = arith.constant 2 : index
    %c0_37 = arith.constant 0 : index
    %c0_38 = arith.constant 0 : index
    %59 = vector.load %arg4[%c0_35, %c2_36, %c0_37, %c0_38] : memref<1x3x8x128xf32, #tpu.memory_space<vmem>>, vector<1x1x8x128xf32>
    %60 = vector.shape_cast %59 : vector<1x1x8x128xf32> to vector<8x128xf32>
    %61 = vector.shape_cast %58 : vector<8x128xf32> to vector<1x1x8x128xf32>
    tpu.vector_store %arg4[%c0_35, %c2_36, %c0_37, %c0_38], %61 {strides = array<i32>} : memref<1x3x8x128xf32, #tpu.memory_space<vmem>>, vector<1x1x8x128xf32>,
    return
  }
  func.func @transform_0(%arg0: i32, %arg1: i32) -> (i32, i32) {
    %c1_i32 = arith.constant 1 : i32
    %0 = arith.muli %arg0, %c1_i32 : i32
    %1 = arith.addi %0, %arg1 : i32
    %c0_i32 = arith.constant 0 : i32
    %c0_i32_0 = arith.constant 0 : i32
    return %1, %c0_i32 : i32, i32
  }
  func.func @transform_1(%arg0: i32, %arg1: i32) -> (i32, i32) {
    %c1_i32 = arith.constant 1 : i32
    %0 = arith.muli %arg0, %c1_i32 : i32
    %1 = arith.addi %0, %arg1 : i32
    %c0_i32 = arith.constant 0 : i32
    %c0_i32_0 = arith.constant 0 : i32
    return %1, %c0_i32 : i32, i32
  }
  func.func @transform_2(%arg0: i32, %arg1: i32) -> (i32, i32, i32, i32) {
    %c0_i32 = arith.constant 0 : i32
    %c0_i32_0 = arith.constant 0 : i32
    %c0_i32_1 = arith.constant 0 : i32
    %c0_i32_2 = arith.constant 0 : i32
    return %arg0, %c0_i32, %c0_i32_0, %c0_i32_1 : i32, i32, i32, i32
  }
}

</mosaic_0001>

<bundles_post_ra>
// kernel: tpu_custom_call.1
= control target key start
LH: loop header
LB: loop body
LE: loop exit
PB: predicated region body
PF: predicated region fallthrough
CT: control target
= control target key end

     0   :  { %7 = vsyncpa [#allocation3], 0  ;;  %s314_s0 = inlined_call_operand.hbm [shape: f32[16,128], index: 0, kind: input, shape index: {}]   ;;  %s315_s1 = inlined_call_operand.hbm [shape: f32[16,128], index: 1, kind: input, shape index: {}]   ;;  %s316_s2 = inlined_call_operand.hbm [shape: f32[1,3,8,128], index: 2, kind: output, shape index: {}]  }
   0x1   :  { %8 = vsyncpa [#allocation6], 0 }
   0x2   :  { %9 = vsyncpa [#allocation4], 0  ;;  %s249_s9 = smov [#allocation2]   ;;  %s177_s13 = scalar_lea.hbm %s314_s0, 256 }
   0x3   :  { %s19_s10 = sshll.u32 %s249_s9, 4  ;;  %p178_p0 = scmp.ne.s32.totalorder %s314_s0, %s177_s13  ;;  %s20_s10 = int_to_ptr.vmem [resolvable:$true] %s19_s10 }
   0x4   :  { %p181_p1 = scmp.lt.u32.totalorder %s177_s13, %s314_s0 }
   0x6   :  { %p183_p2 = pnand %p181_p1, %p178_p0 }
   0x8   :  { %186 = shalt.err (!%p183_p2)
}
   0x9   :  { %s187_s18 = scalar_lea.vmem %s20_s10, 256  ;;  %p192_p4 = scmp.lt.s32.totalorder %s20_s10, %s20_s10 }
   0xa   :  { %p188_p3 = scmp.ne.s32.totalorder %s20_s10, %s187_s18  ;;  %p193_p5 = scmp.lt.s32.totalorder %s187_s18, %s187_s18 }
   0xc   :  { %p194_p6 = por %p193_p5, %p192_p4 }
   0xe   :  { %p195_p7 = pnand %p194_p6, %p188_p3 }
  0x10   :  { %198 = shalt.err (!%p195_p7)
}
  0x11   :  { %s250_s19 = smov 128   ;;  %s251_s20 = smov 8  }
  0x12   :  { %25 = dma.hbm_to_vmem [thread:$0]  %s314_s0, 256, %s20_s10, [#allocation3], %s250_s19, %s250_s19, %s251_s20  }
  0x13   :  { %s252_s23 = smov [#allocation5]   ;;  %s199_s27 = scalar_lea.hbm %s315_s1, 256 }
  0x14   :  { %s35_s24 = sshll.u32 %s252_s23, 4  ;;  %p200_p8 = scmp.ne.s32.totalorder %s315_s1, %s199_s27  ;;  %s36_s24 = int_to_ptr.vmem [resolvable:$true] %s35_s24 }
  0x15   :  { %p203_p9 = scmp.lt.u32.totalorder %s199_s27, %s315_s1 }
  0x17   :  { %p205_p10 = pnand %p203_p9, %p200_p8 }
  0x19   :  { %208 = shalt.err (!%p205_p10)
}
  0x1a   :  { %s209_s4 = scalar_lea.vmem %s36_s24, 256  ;;  %p214_p12 = scmp.lt.s32.totalorder %s36_s24, %s36_s24 }
  0x1b   :  { %p210_p11 = scmp.ne.s32.totalorder %s36_s24, %s209_s4  ;;  %p215_p13 = scmp.lt.s32.totalorder %s209_s4, %s209_s4 }
  0x1d   :  { %p216_p0 = por %p215_p13, %p214_p12 }
  0x1f   :  { %p217_p1 = pnand %p216_p0, %p210_p11 }
  0x21   :  { %220 = shalt.err (!%p217_p1)
}
  0x22   :  { %41 = dma.hbm_to_vmem [thread:$0]  %s315_s1, 256, %s36_s24, [#allocation6], %s250_s19, %s250_s19, %s251_s20  }
  0x23   :  { %243 = dma.done.wait [#allocation3], 256  }
  0x24   :  { %244 = vsyncadd [#allocation3], 4294967040 }
  0x25   :  { %245 = dma.done.wait [#allocation6], 256  }
  0x26   :  { %246 = vsyncadd [#allocation6], 4294967040  ;;  %v59_v0 = vld [vmem:[#allocation2] sm:$0xff]  ;;  %v60_v1 = vld [vmem:[#allocation2 + $0x8] sm:$0xff]  ;;  %s253_s1 = smov [#allocation7]  }
  0x27   :  { %v63_v2 = vand.u32 2147483647, %v59_v0  ;;  %v64_v3 = vand.u32 2147483647, %v60_v1  ;;  %vm89_vm0 = vcmp.ge.f32.partialorder %v59_v0, 0.0  ;;  %vm90_vm1 = vcmp.ge.f32.partialorder %v60_v1, 0.0 }
  0x28   :  { %v103_v15 = vmax.f32 %v59_v0, 0.0  ;;  %v104_v19 = vmax.f32 %v60_v1, 0.0  ;;  %v99_v23 = vmin.f32 %v59_v0, 0.0  ;;  %v100_v27 = vmin.f32 %v60_v1, 0.0  ;;  %v61_v30 = vld [vmem:[#allocation5] sm:$0xff]  ;;  %v62_v35 = vld [vmem:[#allocation5 + $0x8] sm:$0xff] }
  0x29   :  { %v65_v4 = vsub.f32 0.0, %v63_v2  ;;  %v66_v5 = vsub.f32 0.0, %v64_v3  ;;  %v113_v43 = vsub.f32 1.0, %v61_v30  ;;  %v114_v51 = vsub.f32 1.0, %v62_v35  ;;  %s146_s6 = sshll.u32 %s253_s1, 4  ;;  %s147_s6 = int_to_ptr.vmem [resolvable:$true] %s146_s6 }
  0x2a   :  { %v105_v28 = vsub.f32 0.0, %v103_v15  ;;  %v106_v33 = vsub.f32 0.0, %v104_v19  ;;  %s221_s7 = scalar_lea.vmem %s147_s6, 384  ;;  %p226_p3 = scmp.lt.s32.totalorder %s147_s6, %s147_s6 }
  0x2b   :  { %v67_v6 = vmul.f32 1.442695, %v65_v4  ;;  %v69_v7 = vmul.f32 1.442695, %v66_v5  ;;  %p222_p2 = scmp.ne.s32.totalorder %s147_s6, %s221_s7  ;;  %p227_p4 = scmp.lt.s32.totalorder %s221_s7, %s221_s7 }
  0x2d   :  { %165 = vpow2.f32 %v67_v6  ;;  %p228_p5 = por %p227_p4, %p226_p3 }
  0x2e   :  { %167 = vpow2.f32 %v69_v7 }
  0x2f   :  { %p229_p6 = pnand %p228_p5, %p222_p2 }
  0x37   :  { %v166_v8 = vpop.eup %165 }
  0x38   :  { %v168_v9 = vpop.eup %167  ;;  %v71_v10 = vadd.f32 1.0, %v166_v8  ;;  %v74_v12 = vmul.f32 -0.5, %v166_v8  ;;  %v91_v16 = vsel %vm89_vm0, 1.0, %v166_v8  ;;  %v77_v17 = vand.u32 2147483647, %v166_v8 }
  0x39   :  { %v80_v11 = vadd.f32 1.0, %v168_v9  ;;  %v83_v13 = vmul.f32 -0.5, %v168_v9  ;;  %v92_v20 = vsel %vm90_vm1, 1.0, %v168_v9  ;;  %v86_v21 = vand.u32 2147483647, %v168_v9 }
  0x3a   :  { %169 = vrcp.f32 %v71_v10  ;;  %v75_v14 = vadd.f32 1.0, %v74_v12  ;;  %vm78_vm2 = vcmp.lt.f32.partialorder %v77_v17, 0.0004427343 }
  0x3b   :  { %171 = vrcp.f32 %v80_v11  ;;  %v84_v18 = vadd.f32 1.0, %v83_v13  ;;  %vm87_vm3 = vcmp.lt.f32.partialorder %v86_v21, 0.0004427343 }
  0x3c   :  { %173 = vlog2.f32 %v71_v10  ;;  %v76_v26 = vmul.f32 %v166_v8, %v75_v14 }
  0x3d   :  { %175 = vlog2.f32 %v80_v11  ;;  %v85_v32 = vmul.f32 %v168_v9, %v84_v18 }
  0x44   :  { %v170_v22 = vpop.eup %169 }
  0x45   :  { %v172_v24 = vpop.eup %171  ;;  %v96_v25 = vmul.f32 %v170_v22, %v91_v16 }
  0x46   :  { %v174_v29 = vpop.eup %173  ;;  %v98_v31 = vmul.f32 %v172_v24, %v92_v20 }
  0x47   :  { %v176_v34 = vpop.eup %175  ;;  %v123_v36 = vmul.f32 %v96_v25, %v61_v30  ;;  %v125_v37 = vadd.f32 %v96_v25, %v61_v30  ;;  %v73_v38 = vmul.f32 0.6931472, %v174_v29 }
  0x48   :  { %v124_v39 = vmul.f32 %v98_v31, %v62_v35  ;;  %v126_v40 = vadd.f32 %v98_v31, %v62_v35  ;;  %v82_v41 = vmul.f32 0.6931472, %v176_v34 }
  0x49   :  { %v79_v42 = vsel %vm78_vm2, %v76_v26, %v73_v38 }
  0x4a   :  { %v128_v44 = vadd.f32 %v124_v39, %v123_v36  ;;  %v133_v45 = vadd.f32 %v126_v40, %v125_v37  ;;  %v88_v46 = vsel %vm87_vm3, %v85_v32, %v82_v41  ;;  %v101_v47 = vsub.f32 %v99_v23, %v79_v42 }
  0x4b   :  { %v102_v48 = vsub.f32 %v100_v27, %v88_v46  ;;  %v107_v49 = vsub.f32 %v105_v28, %v79_v42  ;;  %v108_v50 = vsub.f32 %v106_v33, %v88_v46 }
  0x4c   :  { %v109_v52 = vmax.f32 %v101_v47, -100.0  ;;  %130 = vst [vmem:[#allocation7] sm:$0xff] %v128_v44  ;;  %135 = vst [vmem:[#allocation7 + $0x8] sm:$0xff] %v133_v45 }
  0x4d   :  { %v110_v53 = vmax.f32 %v102_v48, -100.0  ;;  %v115_v54 = vmax.f32 %v107_v49, -100.0  ;;  %v116_v55 = vmax.f32 %v108_v50, -100.0 }
  0x4e   :  { %v111_v56 = vmul.f32 %v109_v52, %v61_v30 }
  0x4f   :  { %v112_v57 = vmul.f32 %v110_v53, %v62_v35  ;;  %v117_v58 = vmul.f32 %v115_v54, %v113_v43  ;;  %v118_v59 = vmul.f32 %v116_v55, %v114_v51 }
  0x51   :  { %v119_v60 = vadd.f32 %v117_v58, %v111_v56  ;;  %v120_v61 = vadd.f32 %v118_v59, %v112_v57 }
  0x53   :  { %v121_v62 = vsub.f32 0.0, %v119_v60  ;;  %v122_v63 = vsub.f32 0.0, %v120_v61 }
  0x55   :  { %v138_v0 = vadd.f32 %v122_v63, %v121_v62 }
  0x57   :  { %140 = vst [vmem:[#allocation7 + $0x10] sm:$0xff] %v138_v0 }
  0x58   :  { %232 = shalt.err (!%p229_p6)
}
  0x59   :  { %s233_s10 = scalar_lea.hbm %s316_s2, 384 }
  0x5a   :  { %p234_p7 = scmp.ne.s32.totalorder %s316_s2, %s233_s10  ;;  %p237_p8 = scmp.lt.u32.totalorder %s233_s10, %s316_s2 }
  0x5c   :  { %p239_p9 = pnand %p237_p8, %p234_p7 }
  0x5e   :  { %242 = shalt.err (!%p239_p9)
}
  0x5f   :  { %152 = dma.vmem_to_hbm [thread:$0]  %s147_s6, 384, %s316_s2, [#allocation4], %s250_s19, %s250_s19, %s251_s20  }
  0x60   :  { %247 = dma.done.wait [#allocation4], 384  }
  0x61   :  { %248 = vsyncadd [#allocation4], 4294966912 }
  0x62   :  { %156 = vsyncpa [#allocation3], 1 }
  0x63   :  { %157 = vsyncpa [#allocation6], 1 }
  0x64   :  { %158 = vsyncpa [#allocation4], 1 }

</bundles_post_ra>
